<compile_context>
chip_gen: v6e
topology: v6e:2x2x1
jax: 0.10.0
libtpu: 0.0.40
codegen_flags: <defaults>
</compile_context>

<pallas_src>
import math

import jax
import jax.numpy as jnp
from jax.experimental import pallas as pl
from jax.experimental.pallas import tpu as pltpu

C_IN = 24 + 5   # 29
C1, C2, C3 = 48, 72, 96
OUT_LANES = 128  # lane-dense output block; sliced back to 96 in the wrapper


def _kernel(x_ref, w1_ref, b1_ref, w2_ref, b2_ref, w3_ref, b3_ref,
            wa_ref, ba_ref, out_ref):
    tb = out_ref.shape[0]
    r = x_ref.shape[1]          # R = TB * N rows (lanes)
    n = r // tb

    x = x_ref[...]                                                     # (29, R) bf16

    # --- Per-point MLP: channels on sublanes, rows on lanes (MXU) -----------
    h1 = jnp.dot(w1_ref[...], x, preferred_element_type=jnp.float32)   # (48, R) f32
    h1 = jnp.maximum(h1.astype(jnp.bfloat16) + b1_ref[...], 0)         # bf16 epilogue
    h2 = jnp.dot(w2_ref[...], h1, preferred_element_type=jnp.float32)  # (72, R) f32
    h2 = jnp.maximum(h2.astype(jnp.bfloat16) + b2_ref[...], 0)         # bf16 epilogue
    h3 = jnp.dot(w3_ref[...], h2, preferred_element_type=jnp.float32)  # (96, R) f32
    h3 = jnp.maximum(h3 + b3_ref[...], 0.0)                            # keep f32

    # --- Attention tail: VPU/XLU/EUP only (MXU reserved for the layers) -----
    # One transpose back to rows-on-sublanes so the softmax keeps the point
    # axis on lanes and the weighted sum is a sublane reduction.
    h3_rows = jnp.transpose(h3)                        # (R, 96) f32
    h3_3d = h3_rows.reshape(tb, n, C3)                 # (TB, N, 96)

    logits = jnp.sum(h3_3d * wa_ref[...], axis=-1) + ba_ref[...]       # (TB, N)
    m = jnp.max(logits, axis=-1, keepdims=True)                        # (TB, 1)
    p = jnp.exp(logits - m)                                            # (TB, N)
    denom = jnp.sum(p, axis=-1, keepdims=True)                         # (TB, 1)
    attn = p * pl.reciprocal(denom, approx=False)                      # exact recip

    out = jnp.sum(h3_3d * attn[:, :, None], axis=1)                    # (TB, 96)

    out_ref[:, :C3] = out.astype(out_ref.dtype)
    out_ref[:, C3:] = jnp.zeros((tb, OUT_LANES - C3), out_ref.dtype)


def _round_up(a, m):
    return -(-a // m) * m


def _choose_tiling(B, N, *, vmem_budget_bytes=18 * 1024 * 1024):
    """Pick (TB, n_steps).

    Constraints:
      * multi-step blocks need (TB*N) % 128 == 0 (x block lane dim) and
        TB % 8 == 0 (output block sublane dim);
      * stay inside a per-step VMEM budget (targets ~8k rows/step for N>=128);
      * >=2 grid steps when the batch allows it so both v7x TCs get work;
      * keep batch padding small.
    """
    g = math.gcd(N, 128)
    align = max(8, 128 // g)
    n_pad = _round_up(N, 128)
    # Per-batch-element VMEM estimate (bytes): bf16 x double-buffered
    # (29->32 sublanes), bf16 h1/h2 + their f32 dot temporaries, f32 h3,
    # f32 h3 rows-major copy and weighted product (96->128 lane padded),
    # plus the small (N-lane-padded) logits/attn arrays.
    bytes_per_b = N * (128 + 96 + 192 + 144 + 288 + 384 + 512 + 512) + 4 * n_pad
    tb_cap = max(align, (vmem_budget_bytes // bytes_per_b) // align * align)

    if B <= align:
        # Tiny batch: a single full block needs no padding and no alignment
        # (block dims equal the full array dims).
        return B, 1

    n_steps = max(2, -(-B // tb_cap))                 # >=2 steps (v7x megacore)
    tb = _round_up(-(-B // n_steps), align)
    n_steps = -(-B // tb)
    return tb, n_steps


def global_point_ti_net(x, params, *, compute_dtype=jnp.bfloat16):
    """x: (B, N, 29) float32 -> (B, 96) float32."""
    B, N, cin = x.shape
    assert cin == C_IN
    w1, b1, w2, b2, w3, b3, wa, ba = params

    TB, n_steps = _choose_tiling(B, N)
    Bp = TB * n_steps
    if Bp != B:
        x = jnp.pad(x, ((0, Bp - B), (0, 0), (0, 0)))

    # Lane-dense, channels-major input: (C_IN, Bp*N), column r = b*N + n.
    x_t = jnp.transpose(x, (2, 0, 1)).reshape(C_IN, Bp * N).astype(compute_dtype)

    # BN-folded weights, transposed for h^T = W^T @ x^T (bf16 MXU operands);
    # layer-1/2 biases in bf16 (bf16 epilogue), layer-3 / attention head f32.
    w1t = w1.T.astype(compute_dtype)
    w2t = w2.T.astype(compute_dtype)
    w3t = w3.T.astype(compute_dtype)
    b1c = b1.reshape(C1, 1).astype(compute_dtype)
    b2c = b2.reshape(C2, 1).astype(compute_dtype)
    b3c = b3.reshape(C3, 1).astype(jnp.float32)
    wa_row = wa.reshape(1, C3).astype(jnp.float32)
    bac = ba.reshape(1, 1).astype(jnp.float32)

    R = TB * N
    const = lambda *shape: pl.BlockSpec(shape, lambda i: tuple(0 for _ in shape))

    out = pl.pallas_call(
        _kernel,
        out_shape=jax.ShapeDtypeStruct((Bp, OUT_LANES), jnp.float32),
        grid_spec=pltpu.PrefetchScalarGridSpec(
            num_scalar_prefetch=0,
            grid=(n_steps,),
            in_specs=[
                pl.BlockSpec((C_IN, R), lambda i: (0, i)),   # x^T (channels-major)
                const(C1, C_IN), const(C1, 1),               # layer 1
                const(C2, C1),   const(C2, 1),               # layer 2
                const(C3, C2),   const(C3, 1),               # layer 3
                const(1, C3),    const(1, 1),                # attention head
            ],
            out_specs=pl.BlockSpec((TB, OUT_LANES), lambda i: (i, 0)),
        ),
        compiler_params=pltpu.CompilerParams(
            dimension_semantics=("parallel",),
            # Raises v5e's 16 MiB default scoped VMEM; stays well inside
            # v7x's 64 MiB physical VMEM (tiles are budgeted to ~18-23 MiB).
            vmem_limit_bytes=32 * 1024 * 1024),
    )(x_t, w1t, b1c, w2t, b2c, w3t, b3c, wa_row, bac)

    return out[:B, :C3]


def make_params(key):
    """Deterministic synthetic params; BN folded (eval-mode semantics)."""
    ks = jax.random.split(key, 16)
    eps = 1e-5

    def conv_bn(kw, kb, kg, kbeta, km, kv, cin, cout):
        # conv weight (cout, cin, 1) -> used as (cin, cout) matrix
        w = jax.random.normal(kw, (cin, cout), jnp.float32) * (1.0 / jnp.sqrt(cin))
        b = jax.random.normal(kb, (cout,), jnp.float32) * 0.05
        gamma = 1.0 + 0.1 * jax.random.normal(kg, (cout,), jnp.float32)
        beta = 0.1 * jax.random.normal(kbeta, (cout,), jnp.float32)
        mean = 0.1 * jax.random.normal(km, (cout,), jnp.float32)
        var = jnp.abs(1.0 + 0.1 * jax.random.normal(kv, (cout,), jnp.float32))
        scale = gamma / jnp.sqrt(var + eps)
        w_f = w * scale[None, :]
        b_f = (b - mean) * scale + beta
        return w_f, b_f.reshape(1, cout)

    w1, b1 = conv_bn(*ks[0:6], C_IN, C1)
    w2, b2 = conv_bn(*ks[6:12], C1, C2)
    ka, kab = ks[12], ks[13]
    kw3 = jax.random.split(ks[14], 6)
    w3, b3 = conv_bn(*kw3, C2, C3)
    wa = jax.random.normal(ka, (C3, 1), jnp.float32) * (1.0 / jnp.sqrt(C3))
    ba = (0.05 * jax.random.normal(kab, (1, 1), jnp.float32)).astype(jnp.float32)
    return (w1, b1, w2, b2, w3, b3, wa, ba)


def reference(x, params):
    """Pure-JAX f32 reference of the (BN-folded) forward pass."""
    w1, b1, w2, b2, w3, b3, wa, ba = params
    h = jnp.maximum(x @ w1 + b1, 0.0)
    h = jnp.maximum(h @ w2 + b2, 0.0)
    h = jnp.maximum(h @ w3 + b3, 0.0)          # (B, N, 96)
    logits = h @ wa + ba                       # (B, N, 1)
    attn = jax.nn.softmax(logits, axis=1)
    return jnp.sum(h * attn, axis=1)           # (B, 96)


if __name__ == "__main__":
    key = jax.random.PRNGKey(0)
    kx, kp = jax.random.split(key)
    params = make_params(kp)

    # (B=2, N=16): single full block; (B=40, N=24): multi-step grid with batch
    # padding and TB alignment (exercises the blocked code path).
    for (B, N) in [(2, 16), (40, 24)]:
        x = jax.random.normal(jax.random.fold_in(kx, B * 1000 + N),
                              (B, N, C_IN), jnp.float32)
        out = jax.block_until_ready(global_point_ti_net(x, params))
        ref = reference(x, params)
        assert out.shape == (B, C3)
        # bf16 MXU operands / epilogues with f32 accumulation: relaxed tolerance.
        assert jnp.allclose(out, ref, atol=5e-2, rtol=5e-2), \
            f"mismatch vs reference for B={B}, N={N}"
    print("KERNEL_OK")
</pallas_src>

<mosaic_0001>
module attributes {stable_mosaic.version = 11 : i64} {
  func.func @_kernel(%arg0: i32, %arg1: memref<29x32xbf16, #tpu.memory_space<vmem>>, %arg2: memref<48x29xbf16, #tpu.memory_space<vmem>>, %arg3: memref<48x1xbf16, #tpu.memory_space<vmem>>, %arg4: memref<72x48xbf16, #tpu.memory_space<vmem>>, %arg5: memref<72x1xbf16, #tpu.memory_space<vmem>>, %arg6: memref<96x72xbf16, #tpu.memory_space<vmem>>, %arg7: memref<96x1xf32, #tpu.memory_space<vmem>>, %arg8: memref<1x96xf32, #tpu.memory_space<vmem>>, %arg9: memref<1x1xf32, #tpu.memory_space<vmem>>, %arg10: memref<2x128xf32, #tpu.memory_space<vmem>>) attributes {dimension_semantics = [#tpu.dimension_semantics<parallel>], iteration_bounds = array<i64: 1>, scalar_prefetch = 0 : i64, scratch_operands = 0 : i64, tpu.core_type = #tpu.core_type<tc>, window_params = [{transform_indices = @transform_0, window_bounds = array<i64: 29, 32>}, {pipeline_mode = #tpu.pipeline_mode<synchronous>, transform_indices = @transform_1, window_bounds = array<i64: 48, 29>}, {pipeline_mode = #tpu.pipeline_mode<synchronous>, transform_indices = @transform_2, window_bounds = array<i64: 48, 1>}, {pipeline_mode = #tpu.pipeline_mode<synchronous>, transform_indices = @transform_3, window_bounds = array<i64: 72, 48>}, {pipeline_mode = #tpu.pipeline_mode<synchronous>, transform_indices = @transform_4, window_bounds = array<i64: 72, 1>}, {pipeline_mode = #tpu.pipeline_mode<synchronous>, transform_indices = @transform_5, window_bounds = array<i64: 96, 72>}, {pipeline_mode = #tpu.pipeline_mode<synchronous>, transform_indices = @transform_6, window_bounds = array<i64: 96, 1>}, {pipeline_mode = #tpu.pipeline_mode<synchronous>, transform_indices = @transform_7, window_bounds = array<i64: 1, 96>}, {pipeline_mode = #tpu.pipeline_mode<synchronous>, transform_indices = @transform_8, window_bounds = array<i64: 1, 1>}, {transform_indices = @transform_9, window_bounds = array<i64: 2, 128>}]} {
    %c0 = arith.constant 0 : index
    %c0_0 = arith.constant 0 : index
    %0 = vector.load %arg1[%c0, %c0_0] : memref<29x32xbf16, #tpu.memory_space<vmem>>, vector<29x32xbf16>
    %c0_1 = arith.constant 0 : index
    %c0_2 = arith.constant 0 : index
    %1 = vector.load %arg2[%c0_1, %c0_2] : memref<48x29xbf16, #tpu.memory_space<vmem>>, vector<48x29xbf16>
    %cst = arith.constant dense<0.000000e+00> : vector<48x32xf32>
    %2 = tpu.matmul %1, %0, %cst {dimension_numbers = #tpu.dot_dimension_numbers<[1], [0], [0], [1], [0, 0, 1, 1], [], []>} : vector<48x29xbf16>, vector<29x32xbf16>, vector<48x32xf32> -> vector<48x32xf32>
    %3 = arith.truncf %2 : vector<48x32xf32> to vector<48x32xbf16>
    %c0_3 = arith.constant 0 : index
    %c0_4 = arith.constant 0 : index
    %4 = vector.load %arg3[%c0_3, %c0_4] : memref<48x1xbf16, #tpu.memory_space<vmem>>, vector<48x1xbf16>
    %5 = vector.broadcast %4 : vector<48x1xbf16> to vector<48x32xbf16>
    %6 = arith.addf %3, %5 : vector<48x32xbf16>
    %cst_5 = arith.constant 0.000000e+00 : bf16
    %7 = vector.broadcast %cst_5 : bf16 to vector<48x32xbf16>
    %8 = arith.maximumf %6, %7 : vector<48x32xbf16>
    %c0_6 = arith.constant 0 : index
    %c0_7 = arith.constant 0 : index
    %9 = vector.load %arg4[%c0_6, %c0_7] : memref<72x48xbf16, #tpu.memory_space<vmem>>, vector<72x48xbf16>
    %cst_8 = arith.constant dense<0.000000e+00> : vector<72x32xf32>
    %10 = tpu.matmul %9, %8, %cst_8 {dimension_numbers = #tpu.dot_dimension_numbers<[1], [0], [0], [1], [0, 0, 1, 1], [], []>} : vector<72x48xbf16>, vector<48x32xbf16>, vector<72x32xf32> -> vector<72x32xf32>
    %11 = arith.truncf %10 : vector<72x32xf32> to vector<72x32xbf16>
    %c0_9 = arith.constant 0 : index
    %c0_10 = arith.constant 0 : index
    %12 = vector.load %arg5[%c0_9, %c0_10] : memref<72x1xbf16, #tpu.memory_space<vmem>>, vector<72x1xbf16>
    %13 = vector.broadcast %12 : vector<72x1xbf16> to vector<72x32xbf16>
    %14 = arith.addf %11, %13 : vector<72x32xbf16>
    %cst_11 = arith.constant 0.000000e+00 : bf16
    %15 = vector.broadcast %cst_11 : bf16 to vector<72x32xbf16>
    %16 = arith.maximumf %14, %15 : vector<72x32xbf16>
    %c0_12 = arith.constant 0 : index
    %c0_13 = arith.constant 0 : index
    %17 = vector.load %arg6[%c0_12, %c0_13] : memref<96x72xbf16, #tpu.memory_space<vmem>>, vector<96x72xbf16>
    %cst_14 = arith.constant dense<0.000000e+00> : vector<96x32xf32>
    %18 = tpu.matmul %17, %16, %cst_14 {dimension_numbers = #tpu.dot_dimension_numbers<[1], [0], [0], [1], [0, 0, 1, 1], [], []>} : vector<96x72xbf16>, vector<72x32xbf16>, vector<96x32xf32> -> vector<96x32xf32>
    %c0_15 = arith.constant 0 : index
    %c0_16 = arith.constant 0 : index
    %19 = vector.load %arg7[%c0_15, %c0_16] : memref<96x1xf32, #tpu.memory_space<vmem>>, vector<96x1xf32>
    %20 = vector.broadcast %19 : vector<96x1xf32> to vector<96x32xf32>
    %21 = arith.addf %18, %20 : vector<96x32xf32>
    %cst_17 = arith.constant 0.000000e+00 : f32
    %22 = vector.broadcast %cst_17 : f32 to vector<96x32xf32>
    %23 = arith.maximumf %21, %22 : vector<96x32xf32>
    %24 = tpu.transpose %23, [1, 0] : vector<96x32xf32> -> vector<32x96xf32>
    %25 = vector.shape_cast %24 : vector<32x96xf32> to vector<2x16x96xf32>
    %c0_18 = arith.constant 0 : index
    %c0_19 = arith.constant 0 : index
    %26 = vector.load %arg8[%c0_18, %c0_19] : memref<1x96xf32, #tpu.memory_space<vmem>>, vector<1x96xf32>
    %27 = vector.shape_cast %26 : vector<1x96xf32> to vector<1x1x96xf32>
    %28 = vector.broadcast %27 : vector<1x1x96xf32> to vector<2x16x96xf32>
    %29 = arith.mulf %25, %28 : vector<2x16x96xf32>
    %cst_20 = arith.constant dense<0.000000e+00> : vector<2x16xf32>
    %30 = vector.multi_reduction <add>, %29, %cst_20 [2] : vector<2x16x96xf32> to vector<2x16xf32>
    %c0_21 = arith.constant 0 : index
    %c0_22 = arith.constant 0 : index
    %31 = vector.load %arg9[%c0_21, %c0_22] : memref<1x1xf32, #tpu.memory_space<vmem>>, vector<1x1xf32>
    %32 = vector.broadcast %31 : vector<1x1xf32> to vector<2x16xf32>
    %33 = arith.addf %30, %32 : vector<2x16xf32>
    %cst_23 = arith.constant dense<0xFF800000> : vector<2xf32>
    %34 = vector.multi_reduction <maximumf>, %33, %cst_23 [1] : vector<2x16xf32> to vector<2xf32>
    %35 = vector.shape_cast %34 : vector<2xf32> to vector<2x1xf32>
    %36 = vector.broadcast %35 : vector<2x1xf32> to vector<2x16xf32>
    %37 = arith.subf %33, %36 : vector<2x16xf32>
    %38 = math.exp %37 : vector<2x16xf32>
    %cst_24 = arith.constant dense<0.000000e+00> : vector<2xf32>
    %39 = vector.multi_reduction <add>, %38, %cst_24 [1] : vector<2x16xf32> to vector<2xf32>
    %40 = vector.shape_cast %39 : vector<2xf32> to vector<2x1xf32>
    %41 = tpu.reciprocal %40 : vector<2x1xf32> -> vector<2x1xf32>
    %42 = vector.broadcast %41 : vector<2x1xf32> to vector<2x16xf32>
    %43 = arith.mulf %38, %42 : vector<2x16xf32>
    %44 = vector.shape_cast %43 : vector<2x16xf32> to vector<2x16x1xf32>
    %45 = vector.broadcast %44 : vector<2x16x1xf32> to vector<2x16x96xf32>
    %46 = arith.mulf %25, %45 : vector<2x16x96xf32>
    %cst_25 = arith.constant dense<0.000000e+00> : vector<2x96xf32>
    %47 = vector.multi_reduction <add>, %46, %cst_25 [1] : vector<2x16x96xf32> to vector<2x96xf32>
    %c0_26 = arith.constant 0 : index
    %c0_27 = arith.constant 0 : index
    %48 = vector.load %arg10[%c0_26, %c0_27] : memref<2x128xf32, #tpu.memory_space<vmem>>, vector<2x96xf32>
    tpu.vector_store %arg10[%c0_26, %c0_27], %47 {strides = array<i32>} : memref<2x128xf32, #tpu.memory_space<vmem>>, vector<2x96xf32>,
    %cst_28 = arith.constant 0.000000e+00 : f32
    %49 = vector.broadcast %cst_28 : f32 to vector<2x32xf32>
    %c0_29 = arith.constant 0 : index
    %c96 = arith.constant 96 : index
    %50 = vector.load %arg10[%c0_29, %c96] : memref<2x128xf32, #tpu.memory_space<vmem>>, vector<2x32xf32>
    tpu.vector_store %arg10[%c0_29, %c96], %49 {strides = array<i32>} : memref<2x128xf32, #tpu.memory_space<vmem>>, vector<2x32xf32>,
    return
  }
  func.func @transform_0(%arg0: i32) -> (i32, i32) {
    %c0_i32 = arith.constant 0 : i32
    %c0_i32_0 = arith.constant 0 : i32
    return %c0_i32, %arg0 : i32, i32
  }
  func.func @transform_1(%arg0: i32) -> (i32, i32) {
    %c0_i32 = arith.constant 0 : i32
    %c0_i32_0 = arith.constant 0 : i32
    %c0_i32_1 = arith.constant 0 : i32
    return %c0_i32, %c0_i32_0 : i32, i32
  }
  func.func @transform_2(%arg0: i32) -> (i32, i32) {
    %c0_i32 = arith.constant 0 : i32
    %c0_i32_0 = arith.constant 0 : i32
    %c0_i32_1 = arith.constant 0 : i32
    return %c0_i32, %c0_i32_0 : i32, i32
  }
  func.func @transform_3(%arg0: i32) -> (i32, i32) {
    %c0_i32 = arith.constant 0 : i32
    %c0_i32_0 = arith.constant 0 : i32
    %c0_i32_1 = arith.constant 0 : i32
    return %c0_i32, %c0_i32_0 : i32, i32
  }
  func.func @transform_4(%arg0: i32) -> (i32, i32) {
    %c0_i32 = arith.constant 0 : i32
    %c0_i32_0 = arith.constant 0 : i32
    %c0_i32_1 = arith.constant 0 : i32
    return %c0_i32, %c0_i32_0 : i32, i32
  }
  func.func @transform_5(%arg0: i32) -> (i32, i32) {
    %c0_i32 = arith.constant 0 : i32
    %c0_i32_0 = arith.constant 0 : i32
    %c0_i32_1 = arith.constant 0 : i32
    return %c0_i32, %c0_i32_0 : i32, i32
  }
  func.func @transform_6(%arg0: i32) -> (i32, i32) {
    %c0_i32 = arith.constant 0 : i32
    %c0_i32_0 = arith.constant 0 : i32
    %c0_i32_1 = arith.constant 0 : i32
    return %c0_i32, %c0_i32_0 : i32, i32
  }
  func.func @transform_7(%arg0: i32) -> (i32, i32) {
    %c0_i32 = arith.constant 0 : i32
    %c0_i32_0 = arith.constant 0 : i32
    %c0_i32_1 = arith.constant 0 : i32
    return %c0_i32, %c0_i32_0 : i32, i32
  }
  func.func @transform_8(%arg0: i32) -> (i32, i32) {
    %c0_i32 = arith.constant 0 : i32
    %c0_i32_0 = arith.constant 0 : i32
    %c0_i32_1 = arith.constant 0 : i32
    return %c0_i32, %c0_i32_0 : i32, i32
  }
  func.func @transform_9(%arg0: i32) -> (i32, i32) {
    %c0_i32 = arith.constant 0 : i32
    %c0_i32_0 = arith.constant 0 : i32
    return %arg0, %c0_i32 : i32, i32
  }
}

</mosaic_0001>

<bundles_post_ra>
// kernel: tpu_custom_call.1
= control target key start
LH: loop header
LB: loop body
LE: loop exit
PB: predicated region body
PF: predicated region fallthrough
CT: control target
= control target key end

     0   :  { %s1488_s0 = inlined_call_operand.vmem [shape: bf16[29,32], index: 0, kind: input, shape index: {}]   ;;  %s1489_s1 = inlined_call_operand.vmem [shape: bf16[48,29], index: 1, kind: input, shape index: {}]   ;;  %s1490_s2 = inlined_call_operand.vmem [shape: bf16[48,1], index: 2, kind: input, shape index: {}]   ;;  %s1491_s3 = inlined_call_operand.vmem [shape: bf16[72,48], index: 3, kind: input, shape index: {}]   ;;  %s1492_s4 = inlined_call_operand.vmem [shape: bf16[72,1], index: 4, kind: input, shape index: {}]   ;;  %s1493_s5 = inlined_call_operand.vmem [shape: bf16[96,72], index: 5, kind: input, shape index: {}]   ;;  %s1494_s6 = inlined_call_operand.vmem [shape: f32[96,1], index: 6, kind: input, shape index: {}]   ;;  %s1495_s7 = inlined_call_operand.vmem [shape: f32[1,96], index: 7, kind: input, shape index: {}]   ;;  %s1496_s8 = inlined_call_operand.<no memory space> [shape: f32[1,1], index: 8, kind: input, shape index: {}]   ;;  %s1497_s9 = inlined_call_operand.hbm [shape: f32[2,128], index: 9, kind: output, shape index: {}]  }
   0x1   :  { %v14_v0 = vstv %s1496_s8 }
   0x2   :  { %15 = vst [vmem:[#allocation2] sm:$0x1] %v14_v0 }
   0x3   :  { %vm82_vm0 = vcmask 1045504   ;;  %v1191_v1 = vmov 0.0   ;;  %v1143_v2 = vld [vmem:[%s1488_s0 + $0x8] sm:$0x7f]   ;;  %vm83_vm1 = vcmask 1046528   ;;  %v1192_v3 = vmov 65535  }
   0x4   :  { %1070 = vmatprep.subr.bf16.mxu0 %v1191_v1  ;;  %1086 = vmatprep.subr.bf16.mxu1 %v1191_v1  ;;  %v84_v4 = vsel %vm82_vm0, 4294967295, %v1192_v3  ;;  %vm1193_vm2 = vmmov 0   ;;  %v1194_v7 = vmov 0   ;;  %v1144_v8 = vld [vmem:[%s1488_s0] sm:$0xff]   ;;  %v153_v9 = vld [vmem:[%s1490_s2 + $0x10] sm:$0xf] }
   0x5   :  { %v85_v5 = vsel %vm83_vm1, %v84_v4, 0  ;;  %1074 = vmatprep.mubr.msk.bf16.mxu0 %vm1193_vm2, %v1191_v1  ;;  %1092 = vmatprep.mubr.msk.bf16.mxu1 %vm1193_vm2, %v1191_v1  ;;  %v151_v10 = vld [vmem:[%s1490_s2 + $0x8] sm:$0xf]  ;;  %v154_v11 = vld [vmem:[%s1490_s2 + $0x14] sm:$0xf]  ;;  %v1145_v12 = vld [vmem:[%s1489_s1] sm:$0xff]  }
   0x6   :  { %v87_v6 = vand.u32 %v1143_v2, %v85_v5  ;;  %1141 = vset.pattern.permute.xlu0 %v1194_v7  ;;  %1142 = vset.pattern.permute.xlu1 %v1194_v7  ;;  %v152_v13 = vld [vmem:[%s1490_s2 + $0xc] sm:$0xf]  ;;  %vm72_vm3 = vcmask 236544   ;;  %v149_v14 = vld [vmem:[%s1490_s2] sm:$0xf] }
   0x7   :  { %205 = vperm.xlu0 %1141, %v153_v9   ;;  %181 = vperm.xlu1 %1142, %v151_v10   ;;  %v150_v15 = vld [vmem:[%s1490_s2 + $0x4] sm:$0xf]  ;;  %v384_v16 = vld [vmem:[%s1492_s4 + $0x20] sm:$0xf]  ;;  %v1146_v17 = vld [vmem:[%s1489_s1 + $0x8] sm:$0xff]  }
   0x8   :  { %1071 = vmatpush3.bf16.msra.mxu0 %v87_v6  ;;  %v382_v18 = vld [vmem:[%s1492_s4 + $0x18] sm:$0xf]  ;;  %v383_v19 = vld [vmem:[%s1492_s4 + $0x1c] sm:$0xf]  ;;  %v380_v20 = vld [vmem:[%s1492_s4 + $0x10] sm:$0xf] }
   0x9   :  { %1072 = vmatprep.subr.bf16.mxu0 %v1191_v1 }
   0xb   :  { %217 = vperm.xlu0 %1141, %v154_v11   ;;  %193 = vperm.xlu1 %1142, %v152_v13  }
   0xc   :  { %1073 = vmatpush3.bf16.msra.mxu0 %v1144_v8 }
   0xf   :  { %1075 = vmatmul.mubr.msk.bf16.vlgmr.msra.gmra.mxu0 %vm72_vm3, %v1145_v12  ;;  %157 = vperm.xlu0 %1141, %v149_v14  }
  0x10   :  { %1078 = vmatprep.mubr.msk.bf16.mxu0 %vm1193_vm2, %v1191_v1  ;;  %169 = vperm.xlu1 %1142, %v150_v15  }
  0x13   :  { %483 = vperm.xlu0 %1141, %v384_v16  }
  0x14   :  { %459 = vperm.xlu1 %1142, %v382_v18  }
  0x17   :  { %1079 = vmatmul.mubr.msk.bf16.gmra.mxu0 %vm72_vm3, %v1146_v17 }
  0x18   :  { %1082 = vmatprep.mubr.msk.bf16.mxu0 %vm1193_vm2, %v1191_v1 }
  0x19   :  { %16 = vsyncpa [#allocation4], 0  ;;  %471 = vperm.xlu0 %1141, %v383_v19   ;;  %v381_v21 = vld [vmem:[%s1492_s4 + $0x14] sm:$0xf]  ;;  %435 = vperm.xlu1 %1142, %v380_v20   ;;  %v378_v23 = vld [vmem:[%s1492_s4 + $0x8] sm:$0xf]  ;;  %v163_v44 = vlaneseq }
  0x1a   :  { %v1147_v22 = vld [vmem:[%s1489_s1 + $0x10] sm:$0xff]   ;;  %v379_v24 = vld [vmem:[%s1492_s4 + $0xc] sm:$0xf]  ;;  %v376_v25 = vld [vmem:[%s1492_s4] sm:$0xf]  ;;  %vm283_vm4 = vcmask 392192  }
  0x1b   :  { %v377_v26 = vld [vmem:[%s1492_s4 + $0x4] sm:$0xf]  ;;  %v544_v28 = vld [vmem:[%s1494_s6 + $0x8] sm:$0xff]  ;;  %v545_v29 = vld [vmem:[%s1494_s6 + $0x10] sm:$0xff]  ;;  %v1195_v42 = vmov 839922192  }
  0x1c   :  { %v543_v27 = vld [vmem:[%s1494_s6] sm:$0xff]  ;;  %v546_v30 = vld [vmem:[%s1494_s6 + $0x18] sm:$0xff]  ;;  %v548_v32 = vld [vmem:[%s1494_s6 + $0x28] sm:$0xff]  ;;  %v161_v43 = vunpack.c.l.s4 %v1195_v42  ;;  %v1363_v50 = vshrl.u32 %v163_v44, 7  ;;  %vm645_vm5 = vcmask 588800   ;;  %vm664_vm6 = vcmask 1043456  }
  0x1d   :  { %447 = vperm.xlu0 %1141, %v381_v21   ;;  %411 = vperm.xlu1 %1142, %v378_v23   ;;  %v547_v31 = vld [vmem:[%s1494_s6 + $0x20] sm:$0xff]  ;;  %v549_v33 = vld [vmem:[%s1494_s6 + $0x30] sm:$0xff]  ;;  %v550_v34 = vld [vmem:[%s1494_s6 + $0x38] sm:$0xff]  ;;  %vm804_vm7 = vcmask 785408   ;;  %vm846_vm8 = vcmask 130112   ;;  %vm857_vm9 = vcmask 1041409  }
  0x1e   :  { %v551_v35 = vld [vmem:[%s1494_s6 + $0x40] sm:$0xff]  ;;  %v552_v36 = vld [vmem:[%s1494_s6 + $0x48] sm:$0xff]  ;;  %v553_v37 = vld [vmem:[%s1494_s6 + $0x50] sm:$0xff]  ;;  %v162_v49 = vunpack.c.0.s8 %v161_v43  ;;  %vm860_vm10 = vcmask 123904   ;;  %vm988_vm11 = vcmask 779264   ;;  %vm990_vm12 = vcmask 1042176  }
  0x1f   :  { %1083 = vmatmul.mubr.msk.bf16.gmra.mxu0 %vm72_vm3, %v1147_v22  ;;  %v554_v38 = vld [vmem:[%s1494_s6 + $0x58] sm:$0xff]  ;;  %v1148_v19 = vld [vmem:[%s1491_s3] sm:$0xff]   ;;  %v1149_v20 = vld [vmem:[%s1491_s3 + $0x8] sm:$0xff]  }
  0x20   :  { %v1366_v54 = vsub.s32 %v162_v49, %v1363_v50  ;;  %v1150_v21 = vld [vmem:[%s1491_s3 + $0x10] sm:$0xff]   ;;  %v1151_v22 = vld [vmem:[%s1491_s3 + $0x18] sm:$0xff]   ;;  %v1152_v23 = vld [vmem:[%s1491_s3 + $0x20] ss:$0 sps:$4 sm:$0xff]  }
  0x21   :  { %423 = vperm.xlu0 %1141, %v379_v24   ;;  %387 = vperm.xlu1 %1142, %v376_v25   ;;  %v1153_v24 = vld [vmem:[%s1493_s5] sm:$0xff]  }
  0x22   :  { %1122 = vmatprep.mubr.msk.bf16.mxu0 %vm645_vm5, %v1153_v24 }
  0x25   :  { %399 = vperm.xlu0 %1141, %v377_v26   ;;  %557 = vperm.xlu1 %1142, %v543_v27  }
  0x29   :  { %562 = vperm.xlu0 %1141, %v544_v28   ;;  %567 = vperm.xlu1 %1142, %v545_v29  }
  0x2d   :  { %572 = vperm.xlu0 %1141, %v546_v30   ;;  %577 = vperm.xlu1 %1142, %v547_v31  }
  0x31   :  { %582 = vperm.xlu0 %1141, %v548_v32   ;;  %587 = vperm.xlu1 %1142, %v549_v33  }
  0x35   :  { %592 = vperm.xlu0 %1141, %v550_v34   ;;  %597 = vperm.xlu1 %1142, %v551_v35  }
  0x39   :  { %602 = vperm.xlu0 %1141, %v552_v36   ;;  %607 = vperm.xlu1 %1142, %v553_v37  }
  0x3d   :  { %612 = vperm.xlu0 %1141, %v554_v38  }
  0x82   :  { %v206_v46 = vpop.permute.xlu0 %205  ;;  %v182_v47 = vpop.permute.xlu1 %181 }
  0x83   :  { %v214_v57 = vrot.slane %v206_v46, %v1366_v54  ;;  %v190_v59 = vrot.slane %v182_v47, %v1366_v54 }
  0x86   :  { %v218_v53 = vpop.permute.xlu0 %217  ;;  %v194_v55 = vpop.permute.xlu1 %193 }
  0x87   :  { %v226_v58 = vrot.slane %v218_v53, %v1366_v54  ;;  %v202_v60 = vrot.slane %v194_v55, %v1366_v54 }
  0x89   :  { %v1016_v0 = vcombine.low %v214_v57, %v226_v58  ;;  %v1015_v2 = vcombine.low %v190_v59, %v202_v60 }
  0x8a   :  { %v158_v63 = vpop.permute.xlu0 %157 }
  0x8b   :  { %v170_v3 = vpop.permute.xlu1 %169  ;;  %v166_v5 = vrot.slane %v158_v63, %v1366_v54 }
  0x8c   :  { %v178_v6 = vrot.slane %v170_v3, %v1366_v54 }
  0x8e   :  { %v1014_v12 = vcombine.low %v166_v5, %v178_v6  ;;  %v484_v33 = vpop.permute.xlu0 %483 }
  0x8f   :  { %v460_v37 = vpop.permute.xlu1 %459  ;;  %v492_v43 = vrot.slane %v484_v33, %v1366_v54 }
  0x94   :  { %v472_v38 = vpop.permute.xlu0 %471  ;;  %v436_v42 = vpop.permute.xlu1 %435 }
  0x95   :  { %v480_v47 = vrot.slane %v472_v38, %v1366_v54  ;;  %v444_v57 = vrot.slane %v436_v42, %v1366_v54 }
  0x98   :  { %v412_v58 = vpop.permute.xlu1 %411 }
  0x99   :  { %v420_v5 = vrot.slane %v412_v58, %v1366_v54 }
  0xcf   :  { %v123_v39 = vpop.f32.mrf.mxu0 }
  0xd1   :  { %v1076_v40 = vpop.f32.mrf.mxu0 }
  0xd3   :  { %v126_v41 = vpop.f32.mrf.mxu0 }
  0xd4   :  { %v146_v13 = vpack.c.bf16 %v126_v41, %v123_v39 }
  0xd5   :  { %v1077_v45 = vpop.f32.mrf.mxu0 }
  0xd6   :  { %v245_v16 = vadd.bf16 %v1014_v12, %v146_v13  ;;  %v448_v45 = vpop.permute.xlu0 %447 }
  0xd7   :  { %v131_v48 = vpop.f32.mrf.mxu0 }
  0xd8   :  { %v248_v18 = vmax.bf16 %v1194_v7, %v245_v16 }
  0xd9   :  { %v1080_v51 = vpop.f32.mrf.mxu0 }
  0xda   :  { %v424_v60 = vpop.permute.xlu0 %423 }
  0xdb   :  { %v134_v52 = vpop.f32.mrf.mxu0 }
  0xdc   :  { %v147_v8 = vpack.c.bf16 %v134_v52, %v131_v48  ;;  %v468_v48 = vrot.slane %v460_v37, %v1366_v54  ;;  %v1031_v52 = vcombine.low %v492_v43, %v492_v43 }
  0xdd   :  { %v1081_v56 = vpop.f32.mrf.mxu0 }
  0xde   :  { %v246_v14 = vadd.bf16 %v1015_v2, %v147_v8  ;;  %v1030_v55 = vcombine.low %v468_v48, %v480_v47  ;;  %v456_v56 = vrot.slane %v448_v45, %v1366_v54  ;;  %v400_v13 = vpop.permute.xlu0 %399 }
  0xdf   :  { %v139_v61 = vpop.f32.mrf.mxu0  ;;  %v408_v16 = vrot.slane %v400_v13, %v1366_v54 }
  0xe0   :  { %v249_v17 = vmax.bf16 %v1194_v7, %v246_v14  ;;  %v1029_v3 = vcombine.low %v444_v57, %v456_v56  ;;  %v388_v14 = vpop.permute.xlu1 %387 }
  0xe1   :  { %v1084_v62 = vpop.f32.mrf.mxu0 }
  0xe3   :  { %v142_v4 = vpop.f32.mrf.mxu0 }
  0xe4   :  { %v148_v9 = vpack.c.bf16 %v142_v4, %v139_v61  ;;  %v432_v4 = vrot.slane %v424_v60, %v1366_v54 }
  0xe5   :  { %v1085_v10 = vpop.f32.mrf.mxu0 }
  0xe6   :  { %v247_v11 = vadd.bf16 %v1016_v0, %v148_v9 }
  0xe8   :  { %v250_v15 = vmax.bf16 %v1194_v7, %v247_v11 }
  0xea   :  { %1087 = vmatpush3.bf16.msra.mxu1 %v250_v15  ;;  %v1028_v15 = vcombine.low %v420_v5, %v432_v4 }
  0xeb   :  { %1088 = vmatprep.subr.bf16.mxu1 %v1191_v1 }
  0xee   :  { %1089 = vmatpush3.bf16.msra.mxu1 %v249_v17  ;;  %v396_v17 = vrot.slane %v388_v14, %v1366_v54  ;;  %v1154_v54 = vld [vmem:[%s1493_s5 + $0x8] sm:$0xff]  }
  0xef   :  { %1090 = vmatprep.subr.bf16.mxu1 %v1191_v1 }
  0xf2   :  { %1091 = vmatpush3.bf16.msra.mxu1 %v248_v18 }
  0xf5   :  { %1093 = vmatmul.mubr.msk.bf16.vlgmr.msra.gmra.mxu1 %vm283_vm4, %v1148_v19 }
  0xf6   :  { %1096 = vmatprep.mubr.msk.bf16.mxu1 %vm1193_vm2, %v1191_v1 }
  0xfd   :  { %1097 = vmatmul.mubr.msk.bf16.gmra.mxu1 %vm283_vm4, %v1149_v20 }
  0xfe   :  { %1100 = vmatprep.mubr.msk.bf16.mxu1 %vm1193_vm2, %v1191_v1 }
 0x105   :  { %1101 = vmatmul.mubr.msk.bf16.gmra.mxu1 %vm283_vm4, %v1150_v21  ;;  %v1027_v21 = vcombine.low %v396_v17, %v408_v16  ;;  %v1044_v17 = vld [vmem:[%s1495_s7] ss:$0 sm:$0xff]  ;;  %s1196_s7 = smov [#allocation3]  }
 0x106   :  { %1104 = vmatprep.mubr.msk.bf16.mxu1 %vm1193_vm2, %v1191_v1  ;;  %s998_s19 = sshll.u32 %s1196_s7, 4  ;;  %s999_s19 = int_to_ptr.vmem [resolvable:$true] %s998_s19 }
 0x107   :  { %s1169_s20 = scalar_lea.vmem %s999_s19, 32  ;;  %p1174_p1 = scmp.lt.s32.totalorder %s999_s19, %s999_s19 }
 0x108   :  { %p1170_p0 = scmp.ne.s32.totalorder %s999_s19, %s1169_s20  ;;  %p1175_p2 = scmp.lt.s32.totalorder %s1169_s20, %s1169_s20 }
 0x10a   :  { %p1176_p3 = por %p1175_p2, %p1174_p1 }
 0x10c   :  { %p1177_p4 = pnand %p1176_p3, %p1170_p0 }
 0x10d   :  { %1105 = vmatmul.mubr.msk.bf16.gmra.mxu1 %vm283_vm4, %v1151_v22 }
 0x10e   :  { %1108 = vmatprep.mubr.msk.bf16.mxu1 %vm1193_vm2, %v1191_v1 }
 0x115   :  { %1109 = vmatmul.mubr.msk.bf16.gmra.mxu1 %vm283_vm4, %v1152_v23 }
 0x1b5   :  { %v1406_v25 = vpop.f32.mrf.mxu1 }
 0x1b7   :  { %v1094_v26 = vpop.f32.mrf.mxu1 }
 0x1b8   :  { %v1156_v26 = vld [vmem:[%s1493_s5 + $0x18] sm:$0xff]  }
 0x1b9   :  { %v336_v27 = vpop.f32.mrf.mxu1 }
 0x1ba   :  { %v371_v18 = vpack.c.bf16 %v336_v27, %v1406_v25  ;;  %v1155_v25 = vld [vmem:[%s1493_s5 + $0x10] sm:$0xff]   ;;  %v1158_v27 = vld [vmem:[%s1493_s5 + $0x28] sm:$0xff]  }
 0x1bb   :  { %v1095_v28 = vpop.f32.mrf.mxu1 }
 0x1bc   :  { %v521_v22 = vadd.bf16 %v1027_v21, %v371_v18 }
 0x1bd   :  { %v341_v29 = vpop.f32.mrf.mxu1 }
 0x1be   :  { %v526_v24 = vmax.bf16 %v1194_v7, %v521_v22 }
 0x1bf   :  { %v1098_v30 = vpop.f32.mrf.mxu1 }
 0x1c1   :  { %v344_v31 = vpop.f32.mrf.mxu1 }
 0x1c2   :  { %v372_v9 = vpack.c.bf16 %v344_v31, %v341_v29  ;;  %v558_v29 = vpop.permute.xlu1 %557 }
 0x1c3   :  { %v1099_v32 = vpop.f32.mrf.mxu1 }
 0x1c4   :  { %v522_v19 = vadd.bf16 %v1028_v15, %v372_v9 }
 0x1c5   :  { %v349_v34 = vpop.f32.mrf.mxu1 }
 0x1c6   :  { %v527_v23 = vmax.bf16 %v1194_v7, %v522_v19  ;;  %v568_v37 = vpop.permute.xlu1 %567 }
 0x1c7   :  { %v1102_v35 = vpop.f32.mrf.mxu1 }
 0x1c9   :  { %v352_v36 = vpop.f32.mrf.mxu1 }
 0x1ca   :  { %v373_v62 = vpack.c.bf16 %v352_v36, %v349_v34  ;;  %v563_v34 = vpop.permute.xlu0 %562  ;;  %v578_v47 = vpop.permute.xlu1 %577 }
 0x1cb   :  { %v1103_v39 = vpop.f32.mrf.mxu1 }
 0x1cc   :  { %v523_v10 = vadd.bf16 %v1029_v3, %v373_v62 }
 0x1cd   :  { %v357_v40 = vpop.f32.mrf.mxu1 }
 0x1ce   :  { %v528_v20 = vmax.bf16 %v1194_v7, %v523_v10  ;;  %v573_v42 = vpop.permute.xlu0 %572  ;;  %v588_v57 = vpop.permute.xlu1 %587 }
 0x1cf   :  { %v1106_v41 = vpop.f32.mrf.mxu1 }
 0x1d1   :  { %v360_v46 = vpop.f32.mrf.mxu1 }
 0x1d2   :  { %v374_v51 = vpack.c.bf16 %v360_v46, %v357_v40 }
 0x1d3   :  { %v1107_v49 = vpop.f32.mrf.mxu1 }
 0x1d4   :  { %v524_v63 = vadd.bf16 %v1030_v55, %v374_v51 }
 0x1d5   :  { %v365_v53 = vpop.f32.mrf.mxu1 }
 0x1d6   :  { %v375_v59 = vpack.c.bf16 %v365_v53, %v365_v53  ;;  %v529_v12 = vmax.bf16 %v1194_v7, %v524_v63 }
 0x1d7   :  { %v1110_v61 = vpop.f32.mrf.mxu1 }
 0x1d8   :  { %v525_v0 = vadd.bf16 %v1031_v52, %v375_v59  ;;  %v583_v52 = vpop.permute.xlu0 %582 }
 0x1d9   :  { %v368_v2 = vpop.f32.mrf.mxu1 }
 0x1da   :  { %v530_v6 = vmax.bf16 %v1194_v7, %v525_v0  ;;  %v1157_v7 = vld [vmem:[%s1493_s5 + $0x20] sm:$0xff]   ;;  %v598_v2 = vpop.permute.xlu1 %597 }
 0x1db   :  { %v1111_v8 = vpop.f32.mrf.mxu1 }
 0x1dc   :  { %1134 = vmatprep.subr.msk.bf16.mxu0 %vm664_vm6, %v530_v6  ;;  %v666_v11 = vsel %vm664_vm6, %v530_v6, 0  ;;  %v593_v61 = vpop.permute.xlu0 %592 }
 0x1dd   :  { %1113 = vmatpush3.bf16.msra.mxu0 %v666_v11 }
 0x1de   :  { %1114 = vmatprep.subr.bf16.mxu0 %v529_v12  ;;  %v608_v10 = vpop.permute.xlu1 %607 }
 0x1e0   :  { %v603_v6 = vpop.permute.xlu0 %602 }
 0x1e1   :  { %1115 = vmatpush3.bf16.msra.mxu0 %v529_v12 }
 0x1e2   :  { %1116 = vmatprep.subr.bf16.mxu0 %v528_v20 }
 0x1e4   :  { %v613_v13 = vpop.permute.xlu0 %612 }
 0x1e5   :  { %1117 = vmatpush3.bf16.msra.mxu0 %v528_v20 }
 0x1e6   :  { %1118 = vmatprep.subr.bf16.mxu0 %v527_v23 }
 0x1e9   :  { %1119 = vmatpush3.bf16.msra.mxu0 %v527_v23 }
 0x1ea   :  { %1120 = vmatprep.subr.bf16.mxu0 %v526_v24 }
 0x1ed   :  { %1121 = vmatpush3.bf16.msra.mxu0 %v526_v24 }
 0x1f0   :  { %1123 = vmatmul.mubr.msk.bf16.vlgmr.msra.gmra.mxu0 %vm645_vm5, %v1154_v54 }
 0x1f1   :  { %1126 = vmatprep.mubr.msk.bf16.mxu0 %vm645_vm5, %v1155_v25 }
 0x1f8   :  { %1127 = vmatmul.mubr.msk.bf16.gmra.mxu0 %vm645_vm5, %v1156_v26 }
 0x1f9   :  { %1130 = vmatprep.mubr.msk.bf16.mxu0 %vm645_vm5, %v1157_v7 }
 0x200   :  { %1131 = vmatmul.mubr.msk.bf16.gmra.mxu0 %vm645_vm5, %v1158_v27 }
 0x2b0   :  { %v1124_v28 = vpop.f32.mrf.mxu0 }
 0x2b1   :  { %v711_v39 = vadd.f32 %v1124_v28, %v568_v37  ;;  %v1045_v28 = vld [vmem:[#allocation2] ss:$0 sm:$0xff] }
 0x2b2   :  { %v702_v30 = vpop.f32.mrf.mxu0 }
 0x2b3   :  { %v703_v31 = vadd.f32 %v702_v30, %v558_v29  ;;  %v751_v43 = vmax.f32 %v711_v39, 0.0 }
 0x2b4   :  { %v1125_v32 = vpop.f32.mrf.mxu0 }
 0x2b5   :  { %v749_v33 = vmax.f32 %v703_v31, 0.0  ;;  %v714_v45 = vadd.f32 %v1125_v32, %v573_v42  ;;  %v836_v32 = vand.u32 127, %v163_v44 }
 0x2b6   :  { %v705_v35 = vpop.f32.mrf.mxu0 }
 0x2b7   :  { %v706_v36 = vadd.f32 %v705_v35, %v563_v34  ;;  %761 = vxpose.xlu1.b32.start [1/12] (short) (narrow) %v749_v33, 32  ;;  %v752_v48 = vmax.f32 %v714_v45, 0.0  ;;  %v841_v33 = vadd.s32 4294967288, %v836_v32  ;;  %v839_v35 = vsub.s32 %v836_v32, %v1363_v50 }
 0x2b8   :  { %v1128_v38 = vpop.f32.mrf.mxu0 }
 0x2b9   :  { %v750_v40 = vmax.f32 %v706_v36, 0.0  ;;  %v727_v58 = vadd.f32 %v1128_v38, %v588_v57  ;;  %v844_v36 = vsub.s32 %v841_v33, %v1363_v50 }
 0x2ba   :  { %v718_v41 = vpop.f32.mrf.mxu0 }
 0x2bb   :  { %762 = vxpose.xlu1.b32.cont [2/12] (short) (narrow) %v750_v40, 32  ;;  %v719_v49 = vadd.f32 %v718_v41, %v578_v47  ;;  %v755_v62 = vmax.f32 %v727_v58, 0.0 }
 0x2bc   :  { %v1129_v46 = vpop.f32.mrf.mxu0 }
 0x2bd   :  { %v753_v53 = vmax.f32 %v719_v49, 0.0  ;;  %v730_v63 = vadd.f32 %v1129_v46, %v593_v61 }
 0x2be   :  { %v721_v51 = vpop.f32.mrf.mxu0 }
 0x2bf   :  { %763 = vxpose.xlu1.b32.cont [3/12] (short) (narrow) %v751_v43, 32  ;;  %v722_v55 = vadd.f32 %v721_v51, %v583_v52  ;;  %v756_v3 = vmax.f32 %v730_v63, 0.0  ;;  %v867_v51 = vsub.s32 0, %v1363_v50  ;;  %v871_v52 = vsub.s32 1, %v1363_v50 }
 0x2c0   :  { %v1132_v56 = vpop.f32.mrf.mxu0 }
 0x2c1   :  { %v754_v59 = vmax.f32 %v722_v55, 0.0  ;;  %v743_v11 = vadd.f32 %v1132_v56, %v608_v10 }
 0x2c2   :  { %v734_v60 = vpop.f32.mrf.mxu0 }
 0x2c3   :  { %764 = vxpose.xlu1.b32.cont [4/12] (short) (narrow) %v752_v48, 32  ;;  %v735_v4 = vadd.f32 %v734_v60, %v598_v2  ;;  %v759_v14 = vmax.f32 %v743_v11, 0.0 }
 0x2c4   :  { %v1133_v0 = vpop.f32.mrf.mxu0 }
 0x2c5   :  { %v757_v8 = vmax.f32 %v735_v4, 0.0  ;;  %v746_v15 = vadd.f32 %v1133_v0, %v613_v13 }
 0x2c6   :  { %v737_v5 = vpop.f32.mrf.mxu0 }
 0x2c7   :  { %765 = vxpose.xlu1.b32.cont [5/12] (short) (narrow) %v753_v53, 32  ;;  %v738_v9 = vadd.f32 %v737_v5, %v603_v6  ;;  %v760_v16 = vmax.f32 %v746_v15, 0.0 }
 0x2c9   :  { %v758_v12 = vmax.f32 %v738_v9, 0.0 }
 0x2cb   :  { %766 = vxpose.xlu1.b32.cont [6/12] (short) (narrow) %v754_v59, 32 }
 0x2cf   :  { %767 = vxpose.xlu1.b32.cont [7/12] (short) (narrow) %v755_v62, 32 }
 0x2d3   :  { %768 = vxpose.xlu1.b32.cont [8/12] (short) (narrow) %v756_v3, 32 }
 0x2d7   :  { %769 = vxpose.xlu1.b32.cont [9/12] (short) (narrow) %v757_v8, 32 }
 0x2db   :  { %770 = vxpose.xlu1.b32.cont [10/12] (short) (narrow) %v758_v12, 32 }
 0x2df   :  { %771 = vxpose.xlu1.b32.cont [11/12] (short) (narrow) %v759_v14, 32 }
 0x2e3   :  { %772 = vxpose.xlu1.b32.end [12/12] (short) (narrow) %v760_v16, 32 }
 0x333   :  { %v1446_v18 = vpop.trf.xlu1 }
 0x334   :  { %v800_v19 = vmul.f32 %v1044_v17, %v1446_v18 }
 0x336   :  { %v805_v20 = vsel %vm804_vm7, %v800_v19, 0.0 }
 0x337   :  { %806 = vadd.xlane.f32.xlu0 %v805_v20  ;;  %v1450_v21 = vpop.trf.xlu1 }
 0x338   :  { %v801_v22 = vmul.f32 %v1044_v17, %v1450_v21 }
 0x33a   :  { %v808_v23 = vsel %vm804_vm7, %v801_v22, 0.0 }
 0x33b   :  { %809 = vadd.xlane.f32.xlu0 %v808_v23  ;;  %v1454_v24 = vpop.trf.xlu1 }
 0x33c   :  { %v802_v54 = vmul.f32 %v1044_v17, %v1454_v24 }
 0x33e   :  { %v811_v25 = vsel %vm804_vm7, %v802_v54, 0.0 }
 0x33f   :  { %812 = vadd.xlane.f32.xlu0 %v811_v25  ;;  %v1458_v26 = vpop.trf.xlu1 }
 0x340   :  { %v803_v7 = vmul.f32 %v1044_v17, %v1458_v26 }
 0x342   :  { %v814_v27 = vsel %vm804_vm7, %v803_v7, 0.0 }
 0x343   :  { %815 = vadd.xlane.f32.xlu0 %v814_v27 }
 0x359   :  { %824 = vperm.xlu0 %1141, %v1045_v28  }
 0x3c0   :  { %v807_v29 = vpop.xlane.xlu0 %806 }
 0x3c4   :  { %v810_v30 = vpop.xlane.xlu0 %809 }
 0x3c8   :  { %v813_v31 = vpop.xlane.xlu0 %812 }
 0x3cc   :  { %v816_v34 = vpop.xlane.xlu0 %815 }
 0x3d4   :  { %v825_v37 = vpop.permute.xlu0 %824 }
 0x3d5   :  { %v827_v38 = vadd.f32 %v825_v37, %v807_v29  ;;  %v828_v39 = vadd.f32 %v825_v37, %v810_v30  ;;  %v829_v40 = vadd.f32 %v825_v37, %v813_v31  ;;  %v830_v41 = vadd.f32 %v825_v37, %v816_v34 }
 0x3d7   :  { %v840_v42 = vrot.slane %v827_v38, %v839_v35  ;;  %v845_v43 = vrot.slane %v828_v39, %v844_v36  ;;  %v851_v45 = vrot.slane %v829_v40, %v839_v35  ;;  %v855_v46 = vrot.slane %v830_v41, %v844_v36 }
 0x3d9   :  { %v847_v44 = vsel %vm846_vm8, %v845_v43, %v840_v42  ;;  %v856_v47 = vsel %vm846_vm8, %v855_v46, %v851_v45 }
 0x3da   :  { %v858_v48 = vsel %vm857_vm9, %v856_v47, %v847_v44 }
 0x3db   :  { %v861_v49 = vsel %vm860_vm10, %v858_v48, -inf }
 0x3dc   :  { %862 = vmax.xlane.f32.xlu0 %v861_v49 }
 0x465   :  { %v863_v53 = vpop.xlane.xlu0 %862 }
 0x466   :  { %v868_v55 = vrot.slane %v863_v53, %v867_v51  ;;  %v872_v56 = vrot.slane %v863_v53, %v871_v52 }
 0x468   :  { %v875_v57 = vsub.f32 %v827_v38, %v868_v55  ;;  %v876_v58 = vsub.f32 %v828_v39, %v868_v55  ;;  %v877_v59 = vsub.f32 %v829_v40, %v872_v56  ;;  %v878_v62 = vsub.f32 %v830_v41, %v872_v56 }
 0x46a   :  { %v879_v60 = vmul.f32 1.442695, %v875_v57  ;;  %v881_v61 = vmul.f32 1.442695, %v876_v58  ;;  %v883_v63 = vmul.f32 1.442695, %v877_v59 }
 0x46b   :  { %v885_v0 = vmul.f32 1.442695, %v878_v62 }
 0x46c   :  { %1159 = vpow2.f32 %v879_v60 }
 0x46d   :  { %1161 = vpow2.f32 %v881_v61 }
 0x46e   :  { %1163 = vpow2.f32 %v883_v63 }
 0x46f   :  { %1165 = vpow2.f32 %v885_v0 }
 0x479   :  { %v1160_v2 = vpop.eup %1159 }
 0x47a   :  { %v1162_v3 = vpop.eup %1161  ;;  %892 = vperm.xlu1 %1142, %v1160_v2  }
 0x47b   :  { %895 = vperm.xlu0 %1141, %v1162_v3   ;;  %v1164_v50 = vpop.eup %1163 }
 0x47c   :  { %v1166_v4 = vpop.eup %1165 }
 0x47e   :  { %898 = vperm.xlu1 %1142, %v1164_v50  }
 0x482   :  { %901 = vperm.xlu1 %1142, %v1166_v4  }
 0x4f5   :  { %v893_v5 = vpop.permute.xlu1 %892 }
 0x4f6   :  { %v896_v6 = vpop.permute.xlu0 %895  ;;  %v906_v10 = vrot.slane %v893_v5, %v839_v35 }
 0x4f7   :  { %v910_v9 = vrot.slane %v896_v6, %v844_v36 }
 0x4f9   :  { %v899_v8 = vpop.permute.xlu1 %898  ;;  %v911_v14 = vsel %vm846_vm8, %v910_v9, %v906_v10 }
 0x4fa   :  { %v915_v12 = vrot.slane %v899_v8, %v839_v35 }
 0x4fd   :  { %v902_v11 = vpop.permute.xlu1 %901 }
 0x4fe   :  { %v919_v13 = vrot.slane %v902_v11, %v844_v36 }
 0x500   :  { %v920_v15 = vsel %vm846_vm8, %v919_v13, %v915_v12 }
 0x501   :  { %v921_v16 = vsel %vm857_vm9, %v920_v15, %v911_v14 }
 0x502   :  { %v923_v17 = vsel %vm860_vm10, %v921_v16, 0.0 }
 0x503   :  { %924 = vadd.xlane.f32.xlu0 %v923_v17 }
 0x58c   :  { %v925_v19 = vpop.xlane.xlu0 %924 }
 0x58d   :  { %1167 = vrcp.f32 %v925_v19 }
 0x59a   :  { %v1168_v20 = vpop.eup %1167 }
 0x59b   :  { %v931_v22 = vrot.slane %v1168_v20, %v867_v51  ;;  %v935_v25 = vrot.slane %v1168_v20, %v871_v52 }
 0x59d   :  { %v938_v23 = vmul.f32 %v1160_v2, %v931_v22  ;;  %v939_v54 = vmul.f32 %v1162_v3, %v931_v22  ;;  %v940_v7 = vmul.f32 %v1164_v50, %v935_v25  ;;  %v941_v27 = vmul.f32 %v1166_v4, %v935_v25 }
 0x59f   :  { %944 = vperm.xlu1 %1142, %v938_v23  }
 0x5a3   :  { %949 = vperm.xlu1 %1142, %v939_v54  }
 0x5a7   :  { %954 = vperm.xlu1 %1142, %v940_v7  }
 0x5ab   :  { %959 = vperm.xlu1 %1142, %v941_v27  }
 0x61a   :  { %v945_v28 = vpop.permute.xlu1 %944 }
 0x61b   :  { %v962_v29 = vmul.f32 %v945_v28, %v1446_v18 }
 0x61d   :  { %v966_v32 = vsel %vm804_vm7, %v962_v29, 0.0 }
 0x61e   :  { %v950_v30 = vpop.permute.xlu1 %949 }
 0x61f   :  { %v963_v31 = vmul.f32 %v950_v30, %v1450_v21 }
 0x621   :  { %v967_v33 = vsel %vm804_vm7, %v963_v31, 0.0 }
 0x622   :  { %v968_v34 = vadd.f32 %v967_v33, %v966_v32  ;;  %v955_v35 = vpop.permute.xlu1 %954 }
 0x623   :  { %v964_v37 = vmul.f32 %v955_v35, %v1454_v24 }
 0x624   :  { %v969_v36 = vrot.slane %v968_v34, 4 }
 0x625   :  { %v975_v41 = vsel %vm804_vm7, %v964_v37, 0.0 }
 0x626   :  { %v970_v38 = vadd.f32 %v969_v36, %v968_v34  ;;  %v960_v39 = vpop.permute.xlu1 %959 }
 0x627   :  { %v965_v40 = vmul.f32 %v960_v39, %v1458_v26 }
 0x628   :  { %v971_v42 = vrot.slane %v970_v38, 2 }
 0x629   :  { %v976_v18 = vsel %vm804_vm7, %v965_v40, 0.0 }
 0x62a   :  { %v977_v43 = vadd.f32 %v976_v18, %v975_v41  ;;  %v972_v45 = vadd.f32 %v971_v42, %v970_v38 }
 0x62c   :  { %v978_v21 = vrot.slane %v977_v43, 4  ;;  %v973_v47 = vrot.slane %v972_v45, 1 }
 0x62e   :  { %v979_v46 = vadd.f32 %v978_v21, %v977_v43  ;;  %v974_v24 = vadd.f32 %v973_v47, %v972_v45 }
 0x630   :  { %v980_v44 = vrot.slane %v979_v46, 2 }
 0x632   :  { %v981_v48 = vadd.f32 %v980_v44, %v979_v46 }
 0x634   :  { %v982_v49 = vrot.slane %v981_v48, 1 }
 0x636   :  { %v983_v51 = vadd.f32 %v982_v49, %v981_v48 }
 0x638   :  { %v986_v26 = vsel %vm857_vm9, %v983_v51, %v974_v24 }
 0x639   :  { %989 = vst.msk [vmem:[#allocation3] sm:$0x3] %vm988_vm11, %v986_v26 }
 0x63a   :  { %991 = vst.msk [vmem:[#allocation3] sm:$0x3] %vm990_vm12, %v1191_v1 }
 0x63b   :  { %1180 = shalt.err (!%p1177_p4)
}
 0x63c   :  { %1001 = dma.vmem_to_hbm [thread:$0]  %s999_s19, 32, %s1497_s9, [#allocation4]  }
 0x63d   :  { %1189 = dma.done.wait [#allocation4], 32  }
 0x63e   :  { %1190 = vsyncadd [#allocation4], 4294967264 }
 0x63f   :  { %1005 = vsyncpa [#allocation4], 1 }

</bundles_post_ra>
